<compile_context>
chip_gen: v6e
topology: v6e:2x2x1
jax: 0.10.0
libtpu: 0.0.40
codegen_flags: <defaults>
</compile_context>

<pallas_src>
import math
import functools

import jax
import jax.numpy as jnp
from jax.experimental import pallas as pl
from jax.experimental.pallas import tpu as pltpu


def _mha_kernel(*refs, block_h, head_dim, has_mask):
    if has_mask:
        (x_ref, wqkv_ref, bqkv_ref, wo_ref, bo_ref, mask_ref, o_ref, acc_ref) = refs
    else:
        (x_ref, wqkv_ref, bqkv_ref, wo_ref, bo_ref, o_ref, acc_ref) = refs
        mask_ref = None

    h_step = pl.program_id(1)
    Bt, S, D = x_ref.shape
    bh, hd = block_h, head_dim
    ghd = bh * hd

    @pl.when(h_step == 0)
    def _():
        acc_ref[...] = jnp.zeros_like(acc_ref)

    # ---- fused Q|K|V projection for this head group: ONE bf16 MXU matmul ----
    # (softmax scale is already folded into the Q columns/bias in the wrapper)
    x2d = x_ref[...].reshape(Bt * S, D)                                    # bf16
    qkv = jnp.dot(x2d, wqkv_ref[...], preferred_element_type=jnp.float32)
    qkv = (qkv + bqkv_ref[...]).astype(jnp.bfloat16)                       # cast early
    qkv = qkv.reshape(Bt, S, 3 * ghd)          # columns: [Q_g | K_g | V_g], head-major

    if mask_ref is not None:
        mask = mask_ref[...]                   # (Bt, S, S) bf16 -> promoted to f32 in add

    # ---- per-head attention: lane slices + leading-batch einsums, no transposes ----
    ctx_heads = []
    for hh in range(bh):
        q = qkv[:, :, hh * hd:(hh + 1) * hd]                                # (Bt, S, hd)
        k = qkv[:, :, ghd + hh * hd:ghd + (hh + 1) * hd]
        v = qkv[:, :, 2 * ghd + hh * hd:2 * ghd + (hh + 1) * hd]
        s = jnp.einsum("bqd,bkd->bqk", q, k,
                       preferred_element_type=jnp.float32)                 # (Bt, S, S) f32
        if mask_ref is not None:
            s = s + mask
        s = s - jnp.max(s, axis=-1, keepdims=True)
        p = jnp.exp(s)
        l = jnp.sum(p, axis=-1, keepdims=True)
        ctx = jnp.einsum("bqk,bkd->bqd", p.astype(jnp.bfloat16), v,
                         preferred_element_type=jnp.float32)                # (Bt, S, hd) f32
        # normalize the context (S*hd mults) instead of the probabilities (S*S)
        ctx = ctx * pl.reciprocal(l, approx=True)
        ctx_heads.append(ctx.astype(jnp.bfloat16))
    # TODO(synk): dropout on attention weights omitted (eval-mode semantics).

    # ---- merge heads via lane concat; accumulate this group's output projection ----
    if bh > 1:
        ctx_g = jnp.concatenate(ctx_heads, axis=-1).reshape(Bt * S, ghd)
    else:
        ctx_g = ctx_heads[0].reshape(Bt * S, ghd)
    acc_ref[...] += jnp.dot(ctx_g, wo_ref[...], preferred_element_type=jnp.float32)

    @pl.when(h_step == pl.num_programs(1) - 1)
    def _():
        out = acc_ref[...] + bo_ref[...]
        o_ref[...] = out.reshape(Bt, S, D).astype(o_ref.dtype)


def _pick_block_b(B, S):
    # Target >= 256 rows in the (block_b*S, D) projection matmul (v6e/v7x MXU
    # depth), but keep >= 2 batch grid steps when B >= 2 (v7x has 2 TensorCores).
    bb = max(1, min(B, pl.cdiv(256, S)))
    if B >= 2:
        bb = max(1, min(bb, B // 2))
    while B % bb:
        bb -= 1
    return bb


def _pick_block_h(H, hd, block_b, S, budget_bytes=12 * 1024 * 1024):
    """Largest head-group size (divisor of H) whose per-step intermediates fit."""
    def aligned(bh):
        ghd = bh * hd
        # (8,128) block rule for the (D, 3*ghd) / (ghd, D) weight blocks.
        return bh == H or ((3 * ghd) % 128 == 0 and ghd % 8 == 0)

    def interm_bytes(bh):
        ghd = bh * hd
        return (block_b * S * 3 * ghd * 6          # qkv: f32 accumulator + bf16 copy
                + 2 * block_b * S * S * 4          # one head's scores + probs (f32)
                + block_b * S * ghd * 6)           # ctx: f32 + bf16

    divisors = [d for d in range(H, 0, -1) if H % d == 0 and aligned(d)]
    if not divisors:
        return H
    for bh in divisors:                            # largest first
        if interm_bytes(bh) <= budget_bytes:
            return bh
    return divisors[-1]                            # smallest aligned divisor


def multi_head_attention(x, params, mask=None, *, n_heads, block_b=None, block_h=None):
    """x: (B, S, D) float32; params: torch-Linear style weights; mask: (B, S, S) or None."""
    B, S, D = x.shape
    assert D % n_heads == 0, "d_model must be divisible by n_heads"
    hd = D // n_heads
    scale = 1.0 / math.sqrt(hd)
    mm_dtype = jnp.bfloat16

    if block_b is None:
        block_b = _pick_block_b(B, S)
    while B % block_b:
        block_b -= 1
    if block_h is None:
        block_h = _pick_block_h(n_heads, hd, block_b, S)
    assert n_heads % block_h == 0
    ghd = block_h * hd
    ng = n_heads // block_h
    grid = (B // block_b, ng)

    # --- glue (plain JAX): torch-Linear (out,in)->(in,out); fold softmax scale
    #     into Q; pack [Q_g|K_g|V_g] columns per head group; bf16 MXU operands.
    wq_t = params["wq"].T * scale
    wk_t = params["wk"].T
    wv_t = params["wv"].T
    wqkv = jnp.stack([wq_t.reshape(D, ng, ghd),
                      wk_t.reshape(D, ng, ghd),
                      wv_t.reshape(D, ng, ghd)], axis=2).reshape(D, 3 * D).astype(mm_dtype)
    bq = params["bq"] * scale
    bqkv = jnp.stack([bq.reshape(ng, ghd),
                      params["bk"].reshape(ng, ghd),
                      params["bv"].reshape(ng, ghd)], axis=1).reshape(1, 3 * D).astype(jnp.float32)
    wo_t = params["wo"].T.astype(mm_dtype)                    # rows are head-major
    bo = params["bo"].reshape(1, D).astype(jnp.float32)
    x_lp = x.astype(mm_dtype)

    batch_blk = lambda b, h: (b, 0, 0)
    in_specs = [
        pl.BlockSpec((block_b, S, D), batch_blk),              # x
        pl.BlockSpec((D, 3 * ghd), lambda b, h: (0, h)),       # fused QKV weight (per group)
        pl.BlockSpec((1, 3 * ghd), lambda b, h: (0, h)),       # fused QKV bias
        pl.BlockSpec((ghd, D), lambda b, h: (h, 0)),           # out-proj rows of this group
        pl.BlockSpec((1, D), lambda b, h: (0, 0)),             # out-proj bias
    ]
    args = [x_lp, wqkv, bqkv, wo_t, bo]
    if mask is not None:
        in_specs.append(pl.BlockSpec((block_b, S, S), batch_blk))
        args.append(mask.astype(jnp.bfloat16))                 # half the HBM bytes vs f32

    # --- shape-derived VMEM budget (respect physical VMEM per generation) ---
    weights_blk = D * 3 * ghd * 2 + 3 * ghd * 4 + ghd * D * 2 + D * 4
    io_blk = block_b * S * D * (2 + 4)
    mask_blk = block_b * S * S * 2 if mask is not None else 0
    interm = (block_b * S * 3 * ghd * 6
              + 2 * block_b * S * S * 4
              + block_b * S * ghd * 6)
    scratch_bytes = block_b * S * D * 4
    est = 2 * (weights_blk + io_blk + mask_blk) + interm + scratch_bytes
    try:
        phys_vmem = int(pltpu.get_tpu_info().vmem_capacity_bytes)
    except Exception:
        phys_vmem = 64 * 1024 * 1024
    vmem_limit = int(min(int(phys_vmem * 0.75),
                         min(100 * 2**20, max(32 * 2**20, 2 * est))))

    # --- advisory cost estimate so XLA can overlap surrounding ops ---
    flops = 8 * B * S * D * D + 4 * B * n_heads * S * S * hd
    bytes_accessed = (B * S * D * 2 + 4 * D * D * 2 + 4 * D * 4
                      + (B * S * S * 2 if mask is not None else 0)
                      + B * S * D * int(jnp.dtype(x.dtype).itemsize))
    cost = pl.CostEstimate(flops=flops, transcendentals=B * n_heads * S * S,
                           bytes_accessed=int(bytes_accessed))

    kernel = functools.partial(_mha_kernel, block_h=block_h, head_dim=hd,
                               has_mask=mask is not None)

    # TODO(synk): for long sequences add query/KV tiling with an online-softmax
    # (flash) accumulator instead of materializing (S, S) scores per head.
    # TODO(synk): v7x extras not applied: fp8 projection weights and
    # pl.Buffered(1) single-buffering of grid-constant bias blocks.
    return pl.pallas_call(
        kernel,
        out_shape=jax.ShapeDtypeStruct((B, S, D), x.dtype),
        grid_spec=pltpu.PrefetchScalarGridSpec(
            num_scalar_prefetch=0,
            grid=grid,
            in_specs=in_specs,
            out_specs=pl.BlockSpec((block_b, S, D), batch_blk),
            scratch_shapes=[pltpu.VMEM((block_b * S, D), jnp.float32)],
        ),
        compiler_params=pltpu.CompilerParams(
            dimension_semantics=("parallel", "arbitrary"),
            vmem_limit_bytes=vmem_limit,
        ),
        cost_estimate=cost,
    )(*args)


def _reference(x, params, mask=None, *, n_heads):
    """Pure-JAX f32 reference mirroring the PyTorch forward (eval mode)."""
    B, S, D = x.shape
    hd = D // n_heads
    lin = lambda t, w, b: t @ w.T + b
    q = lin(x, params["wq"], params["bq"]).reshape(B, S, n_heads, hd).transpose(0, 2, 1, 3)
    k = lin(x, params["wk"], params["bk"]).reshape(B, S, n_heads, hd).transpose(0, 2, 1, 3)
    v = lin(x, params["wv"], params["bv"]).reshape(B, S, n_heads, hd).transpose(0, 2, 1, 3)
    scores = jnp.einsum("bhqd,bhkd->bhqk", q, k) / math.sqrt(hd)
    if mask is not None:
        scores = scores + mask[:, None, :, :]
    attn = jax.nn.softmax(scores, axis=-1)
    ctx = jnp.einsum("bhqk,bhkd->bhqd", attn, v)
    ctx = ctx.transpose(0, 2, 1, 3).reshape(B, S, D)
    return lin(ctx, params["wo"], params["bo"])


if __name__ == "__main__":
    B, S, D, H = 2, 8, 32, 4

    key = jax.random.PRNGKey(0)
    keys = jax.random.split(key, 10)

    # deterministic parameter init (torch Linear-style uniform bound)
    bound = 1.0 / math.sqrt(D)
    init = lambda k, shape: jax.random.uniform(k, shape, jnp.float32, -bound, bound)
    params = {
        "wq": init(keys[0], (D, D)), "bq": init(keys[1], (D,)),
        "wk": init(keys[2], (D, D)), "bk": init(keys[3], (D,)),
        "wv": init(keys[4], (D, D)), "bv": init(keys[5], (D,)),
        "wo": init(keys[6], (D, D)), "bo": init(keys[7], (D,)),
    }
    x = jax.random.normal(keys[8], (B, S, D), jnp.float32)

    # additive causal mask, broadcast over heads like torch's mask.unsqueeze(1)
    causal = jnp.where(jnp.arange(S)[:, None] >= jnp.arange(S)[None, :], 0.0, -1e9)
    mask = jnp.broadcast_to(causal, (B, S, S)).astype(jnp.float32)

    out_masked = multi_head_attention(x, params, mask, n_heads=H)
    out_nomask = multi_head_attention(x, params, None, n_heads=H)
    jax.block_until_ready((out_masked, out_nomask))

    ref_masked = _reference(x, params, mask, n_heads=H)
    ref_nomask = _reference(x, params, None, n_heads=H)

    assert out_masked.shape == (B, S, D) and out_nomask.shape == (B, S, D)
    # bf16 MXU inputs (with f32 accumulation) -> relaxed tolerance vs f32 reference
    assert jnp.allclose(out_masked, ref_masked, atol=3e-2, rtol=3e-2), "mismatch (masked)"
    assert jnp.allclose(out_nomask, ref_nomask, atol=3e-2, rtol=3e-2), "mismatch (no mask)"

    print("KERNEL_OK")
</pallas_src>

<mosaic_0001>
module attributes {stable_mosaic.version = 11 : i64} {
  func.func @_mha_kernel(%arg0: i32, %arg1: i32, %arg2: memref<1x8x32xbf16, #tpu.memory_space<vmem>>, %arg3: memref<32x96xbf16, #tpu.memory_space<vmem>>, %arg4: memref<1x96xf32, #tpu.memory_space<vmem>>, %arg5: memref<32x32xbf16, #tpu.memory_space<vmem>>, %arg6: memref<1x32xf32, #tpu.memory_space<vmem>>, %arg7: memref<1x8x8xbf16, #tpu.memory_space<vmem>>, %arg8: memref<1x8x32xf32, #tpu.memory_space<vmem>>, %arg9: memref<8x32xf32, #tpu.memory_space<vmem>>) attributes {dimension_semantics = [#tpu.dimension_semantics<parallel>, #tpu.dimension_semantics<arbitrary>], iteration_bounds = array<i64: 2, 1>, scalar_prefetch = 0 : i64, scratch_operands = 1 : i64, tpu.core_type = #tpu.core_type<tc>, window_params = [{transform_indices = @transform_0, window_bounds = array<i64: 1, 8, 32>}, {transform_indices = @transform_1, window_bounds = array<i64: 32, 96>}, {transform_indices = @transform_2, window_bounds = array<i64: 1, 96>}, {transform_indices = @transform_3, window_bounds = array<i64: 32, 32>}, {pipeline_mode = #tpu.pipeline_mode<synchronous>, transform_indices = @transform_4, window_bounds = array<i64: 1, 32>}, {transform_indices = @transform_5, window_bounds = array<i64: 1, 8, 8>}, {transform_indices = @transform_6, window_bounds = array<i64: 1, 8, 32>}]} {
    %c0_i32 = arith.constant 0 : i32
    %0 = arith.cmpi eq, %arg1, %c0_i32 : i32
    %1 = arith.extui %0 : i1 to i32
    %c0_i32_0 = arith.constant 0 : i32
    %2 = arith.cmpi ne, %1, %c0_i32_0 : i32
    scf.if %2 {
      %cst_35 = arith.constant 0.000000e+00 : f32
      %99 = vector.broadcast %cst_35 : f32 to vector<8x32xf32>
      %c0_36 = arith.constant 0 : index
      %c0_37 = arith.constant 0 : index
      %100 = vector.load %arg9[%c0_36, %c0_37] : memref<8x32xf32, #tpu.memory_space<vmem>>, vector<8x32xf32>
      tpu.vector_store %arg9[%c0_36, %c0_37], %99 {strides = array<i32>} : memref<8x32xf32, #tpu.memory_space<vmem>>, vector<8x32xf32>,
    } else {
    }
    %c0 = arith.constant 0 : index
    %c0_1 = arith.constant 0 : index
    %c0_2 = arith.constant 0 : index
    %3 = vector.load %arg2[%c0, %c0_1, %c0_2] : memref<1x8x32xbf16, #tpu.memory_space<vmem>>, vector<1x8x32xbf16>
    %4 = vector.shape_cast %3 : vector<1x8x32xbf16> to vector<8x32xbf16>
    %c0_3 = arith.constant 0 : index
    %c0_4 = arith.constant 0 : index
    %5 = vector.load %arg3[%c0_3, %c0_4] : memref<32x96xbf16, #tpu.memory_space<vmem>>, vector<32x96xbf16>
    %cst = arith.constant dense<0.000000e+00> : vector<8x96xf32>
    %6 = tpu.matmul %4, %5, %cst {dimension_numbers = #tpu.dot_dimension_numbers<[1], [0], [0], [1], [0, 0, 1, 1], [], []>} : vector<8x32xbf16>, vector<32x96xbf16>, vector<8x96xf32> -> vector<8x96xf32>
    %c0_5 = arith.constant 0 : index
    %c0_6 = arith.constant 0 : index
    %7 = vector.load %arg4[%c0_5, %c0_6] : memref<1x96xf32, #tpu.memory_space<vmem>>, vector<1x96xf32>
    %8 = vector.broadcast %7 : vector<1x96xf32> to vector<8x96xf32>
    %9 = arith.addf %6, %8 : vector<8x96xf32>
    %10 = arith.truncf %9 : vector<8x96xf32> to vector<8x96xbf16>
    %11 = vector.shape_cast %10 : vector<8x96xbf16> to vector<1x8x96xbf16>
    %c0_7 = arith.constant 0 : index
    %c0_8 = arith.constant 0 : index
    %c0_9 = arith.constant 0 : index
    %12 = vector.load %arg7[%c0_7, %c0_8, %c0_9] : memref<1x8x8xbf16, #tpu.memory_space<vmem>>, vector<1x8x8xbf16>
    %13 = vector.extract_strided_slice %11 {offsets = [0, 0, 0], sizes = [1, 8, 8], strides = [1, 1, 1]} : vector<1x8x96xbf16> to vector<1x8x8xbf16>
    %14 = vector.extract_strided_slice %11 {offsets = [0, 0, 32], sizes = [1, 8, 8], strides = [1, 1, 1]} : vector<1x8x96xbf16> to vector<1x8x8xbf16>
    %15 = vector.extract_strided_slice %11 {offsets = [0, 0, 64], sizes = [1, 8, 8], strides = [1, 1, 1]} : vector<1x8x96xbf16> to vector<1x8x8xbf16>
    "tpu.trace_start"() <{level = 10 : i32, message = "bqd,bkd->bqk"}> : () -> ()
    %cst_10 = arith.constant dense<0.000000e+00> : vector<1x8x8xf32>
    %16 = tpu.matmul %13, %14, %cst_10 {dimension_numbers = #tpu.dot_dimension_numbers<[2], [2], [1], [1], [0, 0, 0, 1, 1, 1], [0], [0]>} : vector<1x8x8xbf16>, vector<1x8x8xbf16>, vector<1x8x8xf32> -> vector<1x8x8xf32>
    "tpu.trace_stop"() : () -> ()
    %17 = arith.extf %12 : vector<1x8x8xbf16> to vector<1x8x8xf32>
    %18 = arith.addf %16, %17 : vector<1x8x8xf32>
    %cst_11 = arith.constant dense<0xFF800000> : vector<1x8xf32>
    %19 = vector.multi_reduction <maximumf>, %18, %cst_11 [2] : vector<1x8x8xf32> to vector<1x8xf32>
    %20 = vector.shape_cast %19 : vector<1x8xf32> to vector<1x8x1xf32>
    %21 = vector.broadcast %20 : vector<1x8x1xf32> to vector<1x8x8xf32>
    %22 = arith.subf %18, %21 : vector<1x8x8xf32>
    %23 = math.exp %22 : vector<1x8x8xf32>
    %cst_12 = arith.constant dense<0.000000e+00> : vector<1x8xf32>
    %24 = vector.multi_reduction <add>, %23, %cst_12 [2] : vector<1x8x8xf32> to vector<1x8xf32>
    %25 = vector.shape_cast %24 : vector<1x8xf32> to vector<1x8x1xf32>
    %26 = arith.truncf %23 : vector<1x8x8xf32> to vector<1x8x8xbf16>
    "tpu.trace_start"() <{level = 10 : i32, message = "bqk,bkd->bqd"}> : () -> ()
    %cst_13 = arith.constant dense<0.000000e+00> : vector<1x8x8xf32>
    %27 = tpu.matmul %26, %15, %cst_13 {dimension_numbers = #tpu.dot_dimension_numbers<[2], [1], [1], [2], [0, 0, 0, 1, 1, 2], [0], [0]>} : vector<1x8x8xbf16>, vector<1x8x8xbf16>, vector<1x8x8xf32> -> vector<1x8x8xf32>
    "tpu.trace_stop"() : () -> ()
    %28 = tpu.reciprocal %25 {approx = true} : vector<1x8x1xf32> -> vector<1x8x1xf32>
    %29 = vector.broadcast %28 : vector<1x8x1xf32> to vector<1x8x8xf32>
    %30 = arith.mulf %27, %29 : vector<1x8x8xf32>
    %31 = arith.truncf %30 : vector<1x8x8xf32> to vector<1x8x8xbf16>
    %32 = vector.extract_strided_slice %11 {offsets = [0, 0, 8], sizes = [1, 8, 8], strides = [1, 1, 1]} : vector<1x8x96xbf16> to vector<1x8x8xbf16>
    %33 = vector.extract_strided_slice %11 {offsets = [0, 0, 40], sizes = [1, 8, 8], strides = [1, 1, 1]} : vector<1x8x96xbf16> to vector<1x8x8xbf16>
    %34 = vector.extract_strided_slice %11 {offsets = [0, 0, 72], sizes = [1, 8, 8], strides = [1, 1, 1]} : vector<1x8x96xbf16> to vector<1x8x8xbf16>
    "tpu.trace_start"() <{level = 10 : i32, message = "bqd,bkd->bqk"}> : () -> ()
    %cst_14 = arith.constant dense<0.000000e+00> : vector<1x8x8xf32>
    %35 = tpu.matmul %32, %33, %cst_14 {dimension_numbers = #tpu.dot_dimension_numbers<[2], [2], [1], [1], [0, 0, 0, 1, 1, 1], [0], [0]>} : vector<1x8x8xbf16>, vector<1x8x8xbf16>, vector<1x8x8xf32> -> vector<1x8x8xf32>
    "tpu.trace_stop"() : () -> ()
    %36 = arith.extf %12 : vector<1x8x8xbf16> to vector<1x8x8xf32>
    %37 = arith.addf %35, %36 : vector<1x8x8xf32>
    %cst_15 = arith.constant dense<0xFF800000> : vector<1x8xf32>
    %38 = vector.multi_reduction <maximumf>, %37, %cst_15 [2] : vector<1x8x8xf32> to vector<1x8xf32>
    %39 = vector.shape_cast %38 : vector<1x8xf32> to vector<1x8x1xf32>
    %40 = vector.broadcast %39 : vector<1x8x1xf32> to vector<1x8x8xf32>
    %41 = arith.subf %37, %40 : vector<1x8x8xf32>
    %42 = math.exp %41 : vector<1x8x8xf32>
    %cst_16 = arith.constant dense<0.000000e+00> : vector<1x8xf32>
    %43 = vector.multi_reduction <add>, %42, %cst_16 [2] : vector<1x8x8xf32> to vector<1x8xf32>
    %44 = vector.shape_cast %43 : vector<1x8xf32> to vector<1x8x1xf32>
    %45 = arith.truncf %42 : vector<1x8x8xf32> to vector<1x8x8xbf16>
    "tpu.trace_start"() <{level = 10 : i32, message = "bqk,bkd->bqd"}> : () -> ()
    %cst_17 = arith.constant dense<0.000000e+00> : vector<1x8x8xf32>
    %46 = tpu.matmul %45, %34, %cst_17 {dimension_numbers = #tpu.dot_dimension_numbers<[2], [1], [1], [2], [0, 0, 0, 1, 1, 2], [0], [0]>} : vector<1x8x8xbf16>, vector<1x8x8xbf16>, vector<1x8x8xf32> -> vector<1x8x8xf32>
    "tpu.trace_stop"() : () -> ()
    %47 = tpu.reciprocal %44 {approx = true} : vector<1x8x1xf32> -> vector<1x8x1xf32>
    %48 = vector.broadcast %47 : vector<1x8x1xf32> to vector<1x8x8xf32>
    %49 = arith.mulf %46, %48 : vector<1x8x8xf32>
    %50 = arith.truncf %49 : vector<1x8x8xf32> to vector<1x8x8xbf16>
    %51 = vector.extract_strided_slice %11 {offsets = [0, 0, 16], sizes = [1, 8, 8], strides = [1, 1, 1]} : vector<1x8x96xbf16> to vector<1x8x8xbf16>
    %52 = vector.extract_strided_slice %11 {offsets = [0, 0, 48], sizes = [1, 8, 8], strides = [1, 1, 1]} : vector<1x8x96xbf16> to vector<1x8x8xbf16>
    %53 = vector.extract_strided_slice %11 {offsets = [0, 0, 80], sizes = [1, 8, 8], strides = [1, 1, 1]} : vector<1x8x96xbf16> to vector<1x8x8xbf16>
    "tpu.trace_start"() <{level = 10 : i32, message = "bqd,bkd->bqk"}> : () -> ()
    %cst_18 = arith.constant dense<0.000000e+00> : vector<1x8x8xf32>
    %54 = tpu.matmul %51, %52, %cst_18 {dimension_numbers = #tpu.dot_dimension_numbers<[2], [2], [1], [1], [0, 0, 0, 1, 1, 1], [0], [0]>} : vector<1x8x8xbf16>, vector<1x8x8xbf16>, vector<1x8x8xf32> -> vector<1x8x8xf32>
    "tpu.trace_stop"() : () -> ()
    %55 = arith.extf %12 : vector<1x8x8xbf16> to vector<1x8x8xf32>
    %56 = arith.addf %54, %55 : vector<1x8x8xf32>
    %cst_19 = arith.constant dense<0xFF800000> : vector<1x8xf32>
    %57 = vector.multi_reduction <maximumf>, %56, %cst_19 [2] : vector<1x8x8xf32> to vector<1x8xf32>
    %58 = vector.shape_cast %57 : vector<1x8xf32> to vector<1x8x1xf32>
    %59 = vector.broadcast %58 : vector<1x8x1xf32> to vector<1x8x8xf32>
    %60 = arith.subf %56, %59 : vector<1x8x8xf32>
    %61 = math.exp %60 : vector<1x8x8xf32>
    %cst_20 = arith.constant dense<0.000000e+00> : vector<1x8xf32>
    %62 = vector.multi_reduction <add>, %61, %cst_20 [2] : vector<1x8x8xf32> to vector<1x8xf32>
    %63 = vector.shape_cast %62 : vector<1x8xf32> to vector<1x8x1xf32>
    %64 = arith.truncf %61 : vector<1x8x8xf32> to vector<1x8x8xbf16>
    "tpu.trace_start"() <{level = 10 : i32, message = "bqk,bkd->bqd"}> : () -> ()
    %cst_21 = arith.constant dense<0.000000e+00> : vector<1x8x8xf32>
    %65 = tpu.matmul %64, %53, %cst_21 {dimension_numbers = #tpu.dot_dimension_numbers<[2], [1], [1], [2], [0, 0, 0, 1, 1, 2], [0], [0]>} : vector<1x8x8xbf16>, vector<1x8x8xbf16>, vector<1x8x8xf32> -> vector<1x8x8xf32>
    "tpu.trace_stop"() : () -> ()
    %66 = tpu.reciprocal %63 {approx = true} : vector<1x8x1xf32> -> vector<1x8x1xf32>
    %67 = vector.broadcast %66 : vector<1x8x1xf32> to vector<1x8x8xf32>
    %68 = arith.mulf %65, %67 : vector<1x8x8xf32>
    %69 = arith.truncf %68 : vector<1x8x8xf32> to vector<1x8x8xbf16>
    %70 = vector.extract_strided_slice %11 {offsets = [0, 0, 24], sizes = [1, 8, 8], strides = [1, 1, 1]} : vector<1x8x96xbf16> to vector<1x8x8xbf16>
    %71 = vector.extract_strided_slice %11 {offsets = [0, 0, 56], sizes = [1, 8, 8], strides = [1, 1, 1]} : vector<1x8x96xbf16> to vector<1x8x8xbf16>
    %72 = vector.extract_strided_slice %11 {offsets = [0, 0, 88], sizes = [1, 8, 8], strides = [1, 1, 1]} : vector<1x8x96xbf16> to vector<1x8x8xbf16>
    "tpu.trace_start"() <{level = 10 : i32, message = "bqd,bkd->bqk"}> : () -> ()
    %cst_22 = arith.constant dense<0.000000e+00> : vector<1x8x8xf32>
    %73 = tpu.matmul %70, %71, %cst_22 {dimension_numbers = #tpu.dot_dimension_numbers<[2], [2], [1], [1], [0, 0, 0, 1, 1, 1], [0], [0]>} : vector<1x8x8xbf16>, vector<1x8x8xbf16>, vector<1x8x8xf32> -> vector<1x8x8xf32>
    "tpu.trace_stop"() : () -> ()
    %74 = arith.extf %12 : vector<1x8x8xbf16> to vector<1x8x8xf32>
    %75 = arith.addf %73, %74 : vector<1x8x8xf32>
    %cst_23 = arith.constant dense<0xFF800000> : vector<1x8xf32>
    %76 = vector.multi_reduction <maximumf>, %75, %cst_23 [2] : vector<1x8x8xf32> to vector<1x8xf32>
    %77 = vector.shape_cast %76 : vector<1x8xf32> to vector<1x8x1xf32>
    %78 = vector.broadcast %77 : vector<1x8x1xf32> to vector<1x8x8xf32>
    %79 = arith.subf %75, %78 : vector<1x8x8xf32>
    %80 = math.exp %79 : vector<1x8x8xf32>
    %cst_24 = arith.constant dense<0.000000e+00> : vector<1x8xf32>
    %81 = vector.multi_reduction <add>, %80, %cst_24 [2] : vector<1x8x8xf32> to vector<1x8xf32>
    %82 = vector.shape_cast %81 : vector<1x8xf32> to vector<1x8x1xf32>
    %83 = arith.truncf %80 : vector<1x8x8xf32> to vector<1x8x8xbf16>
    "tpu.trace_start"() <{level = 10 : i32, message = "bqk,bkd->bqd"}> : () -> ()
    %cst_25 = arith.constant dense<0.000000e+00> : vector<1x8x8xf32>
    %84 = tpu.matmul %83, %72, %cst_25 {dimension_numbers = #tpu.dot_dimension_numbers<[2], [1], [1], [2], [0, 0, 0, 1, 1, 2], [0], [0]>} : vector<1x8x8xbf16>, vector<1x8x8xbf16>, vector<1x8x8xf32> -> vector<1x8x8xf32>
    "tpu.trace_stop"() : () -> ()
    %85 = tpu.reciprocal %82 {approx = true} : vector<1x8x1xf32> -> vector<1x8x1xf32>
    %86 = vector.broadcast %85 : vector<1x8x1xf32> to vector<1x8x8xf32>
    %87 = arith.mulf %84, %86 : vector<1x8x8xf32>
    %88 = arith.truncf %87 : vector<1x8x8xf32> to vector<1x8x8xbf16>
    %89 = tpu.concatenate %31, %50, %69, %88 in 2 : vector<1x8x8xbf16>, vector<1x8x8xbf16>, vector<1x8x8xbf16>, vector<1x8x8xbf16> -> vector<1x8x32xbf16>
    %90 = vector.shape_cast %89 : vector<1x8x32xbf16> to vector<8x32xbf16>
    %c0_26 = arith.constant 0 : index
    %c0_27 = arith.constant 0 : index
    %91 = vector.load %arg9[%c0_26, %c0_27] : memref<8x32xf32, #tpu.memory_space<vmem>>, vector<8x32xf32>
    %c0_28 = arith.constant 0 : index
    %c0_29 = arith.constant 0 : index
    %92 = vector.load %arg5[%c0_28, %c0_29] : memref<32x32xbf16, #tpu.memory_space<vmem>>, vector<32x32xbf16>
    %cst_30 = arith.constant dense<0.000000e+00> : vector<8x32xf32>
    %93 = tpu.matmul %90, %92, %cst_30 {dimension_numbers = #tpu.dot_dimension_numbers<[1], [0], [0], [1], [0, 0, 1, 1], [], []>} : vector<8x32xbf16>, vector<32x32xbf16>, vector<8x32xf32> -> vector<8x32xf32>
    %94 = arith.addf %91, %93 : vector<8x32xf32>
    %c0_31 = arith.constant 0 : index
    %c0_32 = arith.constant 0 : index
    %95 = vector.load %arg9[%c0_31, %c0_32] : memref<8x32xf32, #tpu.memory_space<vmem>>, vector<8x32xf32>
    tpu.vector_store %arg9[%c0_31, %c0_32], %94 {strides = array<i32>} : memref<8x32xf32, #tpu.memory_space<vmem>>, vector<8x32xf32>,
    %c0_i32_33 = arith.constant 0 : i32
    %96 = arith.cmpi eq, %arg1, %c0_i32_33 : i32
    %97 = arith.extui %96 : i1 to i32
    %c0_i32_34 = arith.constant 0 : i32
    %98 = arith.cmpi ne, %97, %c0_i32_34 : i32
    scf.if %98 {
      %c0_35 = arith.constant 0 : index
      %c0_36 = arith.constant 0 : index
      %99 = vector.load %arg9[%c0_35, %c0_36] : memref<8x32xf32, #tpu.memory_space<vmem>>, vector<8x32xf32>
      %c0_37 = arith.constant 0 : index
      %c0_38 = arith.constant 0 : index
      %100 = vector.load %arg6[%c0_37, %c0_38] : memref<1x32xf32, #tpu.memory_space<vmem>>, vector<1x32xf32>
      %101 = vector.broadcast %100 : vector<1x32xf32> to vector<8x32xf32>
      %102 = arith.addf %99, %101 : vector<8x32xf32>
      %103 = vector.shape_cast %102 : vector<8x32xf32> to vector<1x8x32xf32>
      %c0_39 = arith.constant 0 : index
      %c0_40 = arith.constant 0 : index
      %c0_41 = arith.constant 0 : index
      %104 = vector.load %arg8[%c0_39, %c0_40, %c0_41] : memref<1x8x32xf32, #tpu.memory_space<vmem>>, vector<1x8x32xf32>
      tpu.vector_store %arg8[%c0_39, %c0_40, %c0_41], %103 {strides = array<i32>} : memref<1x8x32xf32, #tpu.memory_space<vmem>>, vector<1x8x32xf32>,
    } else {
    }
    return
  }
  func.func @transform_0(%arg0: i32, %arg1: i32) -> (i32, i32, i32) {
    %c0_i32 = arith.constant 0 : i32
    %c0_i32_0 = arith.constant 0 : i32
    %c0_i32_1 = arith.constant 0 : i32
    return %arg0, %c0_i32, %c0_i32_0 : i32, i32, i32
  }
  func.func @transform_1(%arg0: i32, %arg1: i32) -> (i32, i32) {
    %c0_i32 = arith.constant 0 : i32
    %c0_i32_0 = arith.constant 0 : i32
    return %c0_i32, %arg1 : i32, i32
  }
  func.func @transform_2(%arg0: i32, %arg1: i32) -> (i32, i32) {
    %c0_i32 = arith.constant 0 : i32
    %c0_i32_0 = arith.constant 0 : i32
    return %c0_i32, %arg1 : i32, i32
  }
  func.func @transform_3(%arg0: i32, %arg1: i32) -> (i32, i32) {
    %c0_i32 = arith.constant 0 : i32
    %c0_i32_0 = arith.constant 0 : i32
    return %arg1, %c0_i32 : i32, i32
  }
  func.func @transform_4(%arg0: i32, %arg1: i32) -> (i32, i32) {
    %c0_i32 = arith.constant 0 : i32
    %c0_i32_0 = arith.constant 0 : i32
    %c0_i32_1 = arith.constant 0 : i32
    return %c0_i32, %c0_i32_0 : i32, i32
  }
  func.func @transform_5(%arg0: i32, %arg1: i32) -> (i32, i32, i32) {
    %c0_i32 = arith.constant 0 : i32
    %c0_i32_0 = arith.constant 0 : i32
    %c0_i32_1 = arith.constant 0 : i32
    return %arg0, %c0_i32, %c0_i32_0 : i32, i32, i32
  }
  func.func @transform_6(%arg0: i32, %arg1: i32) -> (i32, i32, i32) {
    %c0_i32 = arith.constant 0 : i32
    %c0_i32_0 = arith.constant 0 : i32
    %c0_i32_1 = arith.constant 0 : i32
    return %arg0, %c0_i32, %c0_i32_0 : i32, i32, i32
  }
}

</mosaic_0001>

<bundles_post_ra>
// kernel: tpu_custom_call.1
= control target key start
LH: loop header
LB: loop body
LE: loop exit
PB: predicated region body
PF: predicated region fallthrough
CT: control target
= control target key end

     0   :  { %s1912_s0 = inlined_call_operand.hbm [shape: bf16[2,8,32], index: 0, kind: input, shape index: {}]   ;;  %s1913_s1 = inlined_call_operand.hbm [shape: bf16[32,96], index: 1, kind: input, shape index: {}]   ;;  %s1914_s2 = inlined_call_operand.vmem [shape: f32[1,96], index: 2, kind: input, shape index: {}]   ;;  %s1915_s3 = inlined_call_operand.hbm [shape: bf16[32,32], index: 3, kind: input, shape index: {}]   ;;  %s1916_s4 = inlined_call_operand.hbm [shape: f32[1,32], index: 4, kind: input, shape index: {}]   ;;  %s1917_s5 = inlined_call_operand.vmem [shape: bf16[2,8,8], index: 5, kind: input, shape index: {}]   ;;  %s1918_s6 = inlined_call_operand.hbm [shape: f32[2,8,32], index: 6, kind: output, shape index: {}]  }
   0x1   :  { %1922 = sst [smem:[#allocation16_spill]] %s1913_s1 }
   0x2   :  { %1923 = sst [smem:[#allocation17_spill]] %s1915_s3 }
   0x3   :  { %11 = vsyncpa [#allocation4], 0 }
   0x4   :  { %13 = vsyncpa [#allocation4 + $0x1], 0 }
   0x5   :  { %14 = vsyncpa [#allocation7], 0 }
   0x6   :  { %15 = vsyncpa [#allocation10], 0 }
   0x7   :  { %16 = vsyncpa [#allocation5], 0 }
   0x8   :  { %18 = vsyncpa [#allocation5 + $0x1], 0  ;;  %s1640_s21 = smov 0   ;;  %s1642_s22 = smov 0  }
   0x9   :  { %s1644_s23 = smov 0   ;;  %s1646_s24 = smov 0  }
   0xa   :  { %s1648_s25 = smov 0   ;;  %s1650_s26 = smov 0  }
   0xb LB: > { %s1132_s27 = sadd.s32 4294967295, %s1580_s26   ;;  %s1133_s28 = sadd.s32 4294967294, %s1580_s26   ;;  %s1580_s26 = sphi %s1650_s26, %s24_s26   ;;  %s1576_s25 = sphi %s1648_s25, %s1942_s25   ;;  %s1572_s24 = sphi %s1646_s24, %s1941_s24   ;;  %s1568_s23 = sphi %s1644_s23, %s1940_s23   ;;  %s1564_s22 = sphi %s1642_s22, %s1939_s22   ;;  %s1560_s21 = sphi %s1640_s21, %s1938_s21  }
   0xc   : > { %p56_p0 = scmp.ne.s32.totalorder %s1564_s22, %s1560_s21  ;;  %p1674_p1 = scmp.eq.s32.totalorder %s1132_s27, 0 }
   0xd   : > { %p1678_p2 = scmp.eq.s32.totalorder %s1132_s27, 1  ;;  %p211_p3 = scmp.eq.s32.totalorder %s1133_s28, 1 }
   0xe   : > { %s1924_s29 = scalar_select %p1674_p1, 1, 0 }
   0xf   : > { %p1684_p4 = por %p1674_p1, %p56_p0  ;;  %p1134_p5 = scmp.ge.s32.totalorder %s1580_s26, 1 }
  0x10   : > { %p1689_p6 = por %p211_p3, %p56_p0  ;;  %p218_p7 = scmp.lt.s32.totalorder %s1580_s26, 3 }
  0x11   : > { %s1926_s7 = scalar_select %p1684_p4, 1, 0 }
  0x12   : > { %s1927_s8 = scalar_select %p1689_p6, 1, 0 }
  0x13   : > { %p1694_p8 = pnand %p1134_p5, %p218_p7  ;;  %s1582_s10 = smov [#allocation6]  }
  0x14   : > { %s232_s11 = sshll.u32 %s1582_s10, 4  ;;  %s1583_s13 = smov [#allocation8]   ;;  %s233_s11 = int_to_ptr.vmem [resolvable:$true] %s232_s11 }
  0x15   : > { %p1271_p9 = pneg %p1694_p8  ;;  %s254_s14 = sshll.u32 %s1583_s13, 4  ;;  %s255_s14 = int_to_ptr.vmem [resolvable:$true] %s254_s14 }
  0x16   : > { %s1584_s15 = smov [#allocation9]   ;;  %s1397_s17 = scalar_lea.vmem %s233_s11, 256 }
  0x17   : > { %p1703_p11 = pnand %p1271_p9, %p1674_p1  ;;  %s268_s16 = sshll.u32 %s1584_s15, 4  ;;  %s269_s16 = int_to_ptr.vmem [resolvable:$true] %s268_s16 }
  0x18   : > { %p1398_p13 = scmp.ne.s32.totalorder %s233_s11, %s1397_s17  ;;  %p1405_p5 = scmp.lt.s32.totalorder %s233_s11, %s233_s11 }
  0x19   : > { %p1388_p12 = pneg %p1703_p11  ;;  %p1406_p7 = scmp.lt.s32.totalorder %s1397_s17, %s1397_s17 }
  0x1b   : > { %p1400_p0 = pnand %p1398_p13, %p1388_p12  ;;  %p1407_p9 = por %p1406_p7, %p1405_p5 }
  0x1d   : > { %p1401_p3 = pneg %p1400_p0 }
  0x1f   : > { %p1408_p10 = pnand %p1407_p9, %p1401_p3 }
  0x21   : > { %1411 = shalt.err (!%p1408_p10)
}
  0x22   : > { %s1585_s18 = smov 64   ;;  %s1586_s19 = smov 4  }
  0x23   : > { %s1930_s1 = sld [smem:[#allocation16_spill]]  ;;  %s1423_s28 = scalar_lea.vmem %s255_s14, 256 }
  0x24   : > { %p1424_p6 = scmp.ne.s32.totalorder %s255_s14, %s1423_s28  ;;  %p1431_p1 = scmp.lt.s32.totalorder %s255_s14, %s255_s14 }
  0x25   : > { %p1432_p4 = scmp.lt.s32.totalorder %s1423_s28, %s1423_s28 }
  0x26   : > { %p1426_p13 = pnand %p1424_p6, %p1388_p12 }
  0x27   : > { %p1433_p5 = por %p1432_p4, %p1431_p1 }
  0x28   : > { %p1427_p0 = pneg %p1426_p13 }
  0x29   : > { %1274 = dma.hbm_to_vmem [thread:$0]  (!%p1703_p11), %s1930_s1, 256, %s233_s11, [#allocation7], %s1585_s18, %s1585_s18, %s1586_s19  }
  0x2a   : > { %p1434_p3 = pnand %p1433_p5, %p1427_p0 }
  0x2c   : > { %1437 = shalt.err (!%p1434_p3)
}
  0x2d   : > { %s1931_s3 = sld [smem:[#allocation17_spill]]  ;;  %s1449_s11 = scalar_lea.vmem %s269_s16, 16 }
  0x2e   : > { %p1450_p10 = scmp.ne.s32.totalorder %s269_s16, %s1449_s11  ;;  %s1456_s15 = scalar_lea.vmem %s269_s16, 32 }
  0x2f   : > { %p1457_p9 = scmp.lt.s32.totalorder %s269_s16, %s269_s16  ;;  %p1458_p13 = scmp.lt.s32.totalorder %s1456_s15, %s1449_s11 }
  0x30   : > { %p1452_p7 = pnand %p1450_p10, %p1388_p12 }
  0x31   : > { %p1459_p1 = por %p1458_p13, %p1457_p9 }
  0x32   : > { %p1453_p6 = pneg %p1452_p7 }
  0x33   : > { %1277 = dma.hbm_to_vmem [thread:$0]  (!%p1703_p11), %s1931_s3, 256, %s255_s14, [#allocation7], %s1585_s18, %s1585_s18, %s1586_s19  }
  0x34   : > { %p1460_p4 = pnand %p1459_p1, %p1453_p6 }
  0x36   : > { %1463 = shalt.err (!%p1460_p4)
}
  0x37   : > { %1280 = dma.hbm_to_vmem [thread:$0]  (!%p1703_p11), %s1916_s4, 16, %s269_s16, [#allocation10]  }
  0x38   : > { %s43_s14 = sadd.s32 1, %s1568_s23  ;;  %s36_s18 = sadd.s32 1, %s1576_s25 }
  0x39   : > { %p50_p12 = scmp.ne.s32.totalorder %s1568_s23, %s1564_s22  ;;  %p38_p0 = scmp.ge.s32.totalorder %s36_s18, 2 }
  0x3a   : > { %p51_p5 = scmp.eq.s32.totalorder %s1580_s26, 0  ;;  %p1292_p10 = scmp.lt.s32.totalorder %s1580_s26, 2 }
  0x3b   : > { %p1740_p3 = por %p1678_p2, %p50_p12  ;;  %s1944_s18 = smov (%p38_p0, %s36_s18), 0 }
  0x3c   : > { %p52_p7 = por %p51_p5, %p50_p12  ;;  %s279_s19 = sand.u32 1, %s1568_s23  }
  0x3d   : > { %s40_s27 = ssub.s32 %s1576_s25, %s1944_s18  ;;  %s1140_s16 = sshll.u32 %s279_s19, 2 }
  0x3e   : > { %p41_p6 = scmp.eq.s32.totalorder %s40_s27, 0  ;;  %s1141_s28 = sshll.u32 %s1576_s25, 6 }
  0x3f   : > { %s288_s30 = scalar_lea.hbm %s1912_s0, %s1141_s28  ;;  %s283_s15 = scalar_lea.vmem [#allocation3], %s1140_s16 }
  0x40   : > { %s1752_s10 = scalar_select %p41_p6, %s1568_s23, %s43_s14  }
  0x41   : > { %s290_s17 = sshll.u32 %s283_s15, 4  ;;  %p1759_p2 = pnand %p1292_p10, %p52_p7  ;;  %s291_s17 = int_to_ptr.vmem [resolvable:$true] %s290_s17 }
  0x42   : > { %s280_s1 = scalar_lea.sflag [#allocation4], %s279_s19  ;;  %s1477_s27 = scalar_lea.vmem %s291_s17, 64 }
  0x43   : > { %p1466_p11 = pneg %p1759_p2  ;;  %p1478_p9 = scmp.ne.s32.totalorder %s291_s17, %s1477_s27 }
  0x44   : > { %s1587_s14 = smov [#allocation3]  }
  0x45   : > { %p1480_p13 = pnand %p1478_p9, %p1466_p11  ;;  %s1482_s3 = sshll.u32 %s1587_s14, 4  ;;  %s1483_s3 = int_to_ptr.vmem [resolvable:$false] %s1482_s3 }
  0x46   : > { %s1484_s28 = scalar_lea.vmem %s1483_s3, 128  ;;  %p1485_p4 = scmp.lt.s32.totalorder %s291_s17, %s1483_s3 }
  0x47   : > { %p1481_p1 = pneg %p1480_p13  ;;  %p1486_p12 = scmp.lt.s32.totalorder %s1484_s28, %s1477_s27 }
  0x49   : > { %p1487_p0 = por %p1486_p12, %p1485_p4 }
  0x4b   : > { %p1488_p5 = pnand %p1487_p0, %p1481_p1 }
  0x4d   : > { %1491 = shalt.err (!%p1488_p5)
}
  0x4e   : > { %1284 = dma.hbm_to_vmem [thread:$0]  (!%p1759_p2), %s288_s30, 64, %s291_s17, %s280_s1  }
  0x4f   : > { %306 = sbr.rel (%p1694_p8) target bundleno = 1358 (0x54e), region = 44  ;;  %s1770_s19 = sand.u32 (!%p1694_p8), 1, %s1564_s22  }
  0x50   : > { %s1143_s16 = sshll.u32 (!%p1694_p8), %s1770_s19, 2  ;;  %s309_s13 = scalar_lea.sflag (!%p1694_p8), [#allocation4], %s1770_s19 }
  0x51   : > { %s312_s11 = scalar_lea.vmem (!%p1694_p8), [#allocation3], %s1143_s16  ;;  %p1934_p10 = scmp.ne.s32.totalorder (!%p1694_p8), %s1926_s7, 0 }
  0x54   : > { %1543 = dma.done.wait (%p1934_p10), %s309_s13, 64  }
  0x55   : > { %1545 = vsyncadd (%p1934_p10), %s309_s13, 4294967232  ;;  %p1935_p7 = scmp.ne.s32.totalorder %s1924_s29, 0 }
  0x57   : > { %1547 = dma.done.wait (%p1935_p7), [#allocation7], 512  }
  0x58   : > { %1549 = vsyncadd (%p1935_p7), [#allocation7], 4294966784 }
  0x59   : > { %1551 = dma.done.wait (%p1935_p7), [#allocation10], 16  }
  0x5a   : > { %1553 = vsyncadd (%p1935_p7), [#allocation10], 4294967280  ;;  %vm373_vm0 = vcmask 261120   ;;  %v1588_v0 = vmov 0.0   ;;  %vm1589_vm1 = vmmov 0   ;;  %v1366_v1 = vld [vmem:[#allocation6 + $0x8] sm:$0xff]  }
  0x5b   : > { %1191 = vmatprep.subr.bf16.mxu0 %v1588_v0  ;;  %1195 = vmatprep.mubr.msk.bf16.mxu0 %vm1589_vm1, %v1588_v0  ;;  %374 = vst.msk [vmem:[#allocation2] sm:$0xff] %vm373_vm0, %v1588_v0  ;;  %v1367_v2 = vld [vmem:[#allocation6] sm:$0xff]   ;;  %v375_v3 = vld [vmem:[%s312_s11] sm:$0xf]  ;;  %v1149_v4 = vld [vmem:[%s1914_s2] ss:$0 sm:$0xff] }
  0x5c   : > { %1199 = vmatprep.subr.bf16.mxu1 %v1588_v0  ;;  %1201 = vmatprep.mubr.msk.bf16.mxu1 %vm1589_vm1, %v1588_v0  ;;  %s1590_s29 = smov 120   ;;  %s1591_s7 = smov 96   ;;  %vm449_vm2 = vcmask 64512   ;;  %vm511_vm3 = vcmask 1043456   ;;  %vm903_vm4 = vcmask 130048   ;;  %vm906_vm5 = vcmask 195584  }
  0x5d   : > { %1192 = vmatpush3.bf16.msra.mxu0 %v1366_v1  ;;  %s1592_s9 = smov 80   ;;  %s1593_s30 = smov 88  }
  0x5e   : > { %1193 = vmatprep.subr.bf16.mxu0 %v1588_v0  ;;  %s1594_s15 = smov 72   ;;  %s1595_s17 = smov 112  }
  0x5f   : > { %s1596_s20 = smov 104   ;;  %p364_p8 = scmp.lt.s32.totalorder %s1572_s24, 1 }
  0x60   : > { %s1597_s11 = smov 56   ;;  %s1598_s1 = smov 64  }
  0x61   : > { %1194 = vmatpush3.bf16.msra.mxu0 %v1367_v2  ;;  %s365_s27 = scalar_select %p364_p8, %s1572_s24, 1 }
  0x62   : > { %1205 = vmatprep.subr.bf16.mxu0 %v1588_v0  ;;  %s1599_s3 = smov 40  }
  0x63   : > { %s1148_s14 = sshll.u32 %s365_s27, 2 }
  0x64   : > { %1196 = vmatmul.mubr.msk.bf16.vlgmr.msra.gmra.mxu0 %vm373_vm0, %v375_v3  ;;  %s367_s13 = scalar_lea.vmem %s1917_s5, %s1148_s14 }
  0x65   : > { %1207 = vmatprep.mubr.msk.bf16.mxu0 %vm1589_vm1, %v1588_v0  ;;  %v444_v22 = vld [vmem:[%s367_s13] sm:$0xf]  ;;  %s984_s13 = scalar_lea.sflag [#allocation5], %s1770_s19 }
  0x66   : > { %v445_v23 = vunpack.c.l.bf16 %v444_v22 }
 0x124   : > { %v437_v5 = vpop.f32.mrf.mxu0 }
 0x125   : > { %v438_v6 = vadd.f32 %v1149_v4, %v437_v5 }
 0x126   : > { %v1197_v7 = vpop.f32.mrf.mxu0 }
 0x127   : > { %v1802_v8 = vpack.c.bf16 %v438_v6, %v438_v6 }
 0x128   : > { %v440_v9 = vpop.f32.mrf.mxu0 }
 0x129   : > { %558 = vrot.lane.b32.xlu1 %v1802_v8, %s1590_s29  ;;  %447 = vrot.lane.b32.xlu0 %v1802_v8, %s1591_s7  ;;  %s1600_s29 = smov 48   ;;  %s1601_s7 = smov 8  }
 0x12a   : > { %v1198_v10 = vpop.f32.mrf.mxu0 }
 0x12d   : > { %671 = vrot.lane.b32.xlu1 %v1802_v8, %s1592_s9  ;;  %560 = vrot.lane.b32.xlu0 %v1802_v8, %s1593_s30  ;;  %s1602_s9 = smov 16   ;;  %s1603_s30 = smov 24  }
 0x131   : > { %782 = vrot.lane.b32.xlu1 %v1802_v8, %s1594_s15  ;;  %669 = vrot.lane.b32.xlu0 %v1802_v8, %s1595_s17  ;;  %s1147_s15 = sshll.u32 %s1770_s19, 3  ;;  %s1166_s17 = sshll.u32 %s1572_s24, 7 }
 0x132   : > { %s995_s16 = scalar_lea.hbm %s1918_s6, %s1166_s17 }
 0x135   : > { %780 = vrot.lane.b32.xlu0 %v1802_v8, %s1596_s20  ;;  %s359_s20 = scalar_lea.vmem [#allocation11], %s1147_s15 }
 0x136   : > { %s997_s27 = sshll.u32 %s359_s20, 4  ;;  %s998_s27 = int_to_ptr.vmem [resolvable:$true] %s997_s27 }
 0x19b   : > { %v448_v11 = vpop.permute.xlu0 %447  ;;  %v559_v14 = vpop.permute.xlu1 %558 }
 0x19c   : > { %v454_v12 = vsel %vm449_vm2, %v448_v11, 0 }
 0x19d   : > { %1200 = vmatpush3.bf16.xpose.msra.mxu1 %v454_v12 }
 0x19e   : > { %1211 = vmatprep.subr.bf16.mxu1 %v1588_v0 }
 0x19f   : > { %v561_v13 = vpop.permute.xlu0 %560  ;;  %v672_v16 = vpop.permute.xlu1 %671 }
 0x1a0   : > { %v566_v15 = vsel %vm449_vm2, %v561_v13, 0  ;;  %v677_v17 = vsel %vm449_vm2, %v672_v16, 0 }
 0x1a3   : > { %v783_v18 = vpop.permute.xlu1 %782  ;;  %v670_v19 = vpop.permute.xlu0 %669 }
 0x1a4   : > { %1202 = vmatmul.mubr.msk.bf16.vlgmr.msra.gmra.mxu1 %vm449_vm2, %v1802_v8  ;;  %v788_v20 = vsel %vm449_vm2, %v783_v18, 0 }
 0x1a5   : > { %1212 = vmatpush3.bf16.xpose.msra.mxu1 %v566_v15  ;;  %1213 = vmatprep.mubr.msk.bf16.mxu1 %vm1589_vm1, %v1588_v0 }
 0x1a6   : > { %1223 = vmatprep.subr.bf16.mxu1 %v1588_v0 }
 0x1a7   : > { %v781_v21 = vpop.permute.xlu0 %780 }
 0x1ac   : > { %1214 = vmatmul.mubr.msk.bf16.vlgmr.msra.gmra.mxu1 %vm449_vm2, %v559_v14 }
 0x1ad   : > { %1224 = vmatpush3.bf16.xpose.msra.mxu1 %v677_v17  ;;  %1225 = vmatprep.mubr.msk.bf16.mxu1 %vm1589_vm1, %v1588_v0 }
 0x1ae   : > { %1235 = vmatprep.subr.bf16.mxu1 %v1588_v0 }
 0x1b4   : > { %1226 = vmatmul.mubr.msk.bf16.vlgmr.msra.gmra.mxu1 %vm449_vm2, %v670_v19 }
 0x1b5   : > { %1236 = vmatpush3.bf16.xpose.msra.mxu1 %v788_v20  ;;  %1237 = vmatprep.mubr.msk.bf16.mxu1 %vm1589_vm1, %v1588_v0 }
 0x1b6   : > { %1247 = vmatprep.subr.bf16.mxu1 %v1588_v0 }
 0x1bc   : > { %1238 = vmatmul.mubr.msk.bf16.vlgmr.msra.gmra.mxu1 %vm449_vm2, %v781_v21 }
 0x1bd   : > { %1251 = vmatprep.mubr.msk.bf16.mxu1 %vm1589_vm1, %v1588_v0 }
 0x264   : > { %v490_v24 = vpop.f32.mrf.mxu1 }
 0x265   : > { %v491_v25 = vadd.f32 %v490_v24, %v445_v23 }
 0x266   : > { %v1203_v26 = vpop.f32.mrf.mxu1 }
 0x267   : > { %v496_v27 = vsel %vm449_vm2, %v491_v25, -inf }
 0x268   : > { %497 = vmax.xlane.f32.xlu1 %v496_v27  ;;  %v493_v28 = vpop.f32.mrf.mxu1 }
 0x26a   : > { %v1204_v29 = vpop.f32.mrf.mxu1 }
 0x26c   : > { %v602_v30 = vpop.f32.mrf.mxu1 }
 0x26d   : > { %v603_v31 = vadd.f32 %v602_v30, %v445_v23  ;;  %v1368_v30 = vld [vmem:[#allocation8 + $0x8] sm:$0xff]  }
 0x26e   : > { %v1215_v32 = vpop.f32.mrf.mxu1  ;;  %1248 = vmatpush3.bf16.msra.mxu1 %v1368_v30 }
 0x26f   : > { %v608_v33 = vsel %vm449_vm2, %v603_v31, -inf  ;;  %1249 = vmatprep.subr.bf16.mxu1 %v1588_v0 }
 0x270   : > { %609 = vmax.xlane.f32.xlu0 %v608_v33  ;;  %v605_v34 = vpop.f32.mrf.mxu1 }
 0x272   : > { %v1216_v35 = vpop.f32.mrf.mxu1 }
 0x274   : > { %v713_v36 = vpop.f32.mrf.mxu1 }
 0x275   : > { %v714_v37 = vadd.f32 %v713_v36, %v445_v23 }
 0x276   : > { %v1227_v38 = vpop.f32.mrf.mxu1 }
 0x277   : > { %v719_v39 = vsel %vm449_vm2, %v714_v37, -inf }
 0x278   : > { %720 = vmax.xlane.f32.xlu0 %v719_v39  ;;  %v716_v40 = vpop.f32.mrf.mxu1 }
 0x279   : > { %618 = vrot.lane.b32.xlu1 %v1802_v8, %s1597_s11  ;;  %s1492_s11 = scalar_lea.vmem %s998_s27, 128 }
 0x27a   : > { %v1228_v41 = vpop.f32.mrf.mxu1  ;;  %p1493_p6 = scmp.ne.s32.totalorder %s998_s27, %s1492_s11 }
 0x27c   : > { %v824_v42 = vpop.f32.mrf.mxu1  ;;  %p1494_p2 = pnand %p1493_p6, %p1740_p3 }
 0x27d   : > { %v825_v46 = vadd.f32 %v824_v42, %v445_v23 }
 0x27e   : > { %v1239_v43 = vpop.f32.mrf.mxu1  ;;  %p1495_p11 = pneg %p1494_p2 }
 0x27f   : > { %v830_v47 = vsel %vm449_vm2, %v825_v46, -inf }
 0x280   : > { %v827_v44 = vpop.f32.mrf.mxu1 }
 0x282   : > { %v1240_v45 = vpop.f32.mrf.mxu1 }
 0x28e   : > { %506 = vrot.lane.b32.xlu0 %v1802_v8, %s1598_s1  ;;  %s1604_s1 = smov [#allocation11]  }
 0x292   : > { %840 = vrot.lane.b32.xlu0 %v1802_v8, %s1599_s3  ;;  %s1496_s3 = sshll.u32 %s1604_s1, 4  ;;  %s1497_s3 = int_to_ptr.vmem [resolvable:$false] %s1496_s3 }
 0x293   : > { %s1498_s24 = scalar_lea.vmem %s1497_s3, 256  ;;  %p1499_p9 = scmp.lt.s32.totalorder %s998_s27, %s1497_s3 }
 0x294   : > { %p1500_p13 = scmp.lt.s32.totalorder %s1498_s24, %s1492_s11 }
 0x296   : > { %p1501_p1 = por %p1500_p13, %p1499_p9 }
 0x298   : > { %p1502_p4 = pnand %p1501_p1, %p1495_p11 }
 0x29d   : > { %831 = vmax.xlane.f32.xlu1 %v830_v47 }
 0x2ae   : > { %729 = vrot.lane.b32.xlu1 %v1802_v8, %s1600_s29 }
 0x2f1   : > { %v498_v48 = vpop.xlane.xlu1 %497 }
 0x2f2   : > { %v499_v49 = vsub.f32 %v491_v25, %v498_v48 }
 0x2f4   : > { %v500_v50 = vmul.f32 1.442695, %v499_v49 }
 0x2f5   : > { %v619_v60 = vpop.permute.xlu1 %618 }
 0x2f6   : > { %1370 = vpow2.f32 %v500_v50  ;;  %v624_v62 = vsel %vm511_vm3, %v619_v60, 0 }
 0x2f9   : > { %v610_v51 = vpop.xlane.xlu0 %609 }
 0x2fa   : > { %v611_v52 = vsub.f32 %v603_v31, %v610_v51  ;;  %v1369_v31 = vld [vmem:[#allocation8] sm:$0xff]  }
 0x2fb   : > { %1250 = vmatpush3.bf16.msra.mxu1 %v1369_v31 }
 0x2fc   : > { %v612_v53 = vmul.f32 1.442695, %v611_v52 }
 0x2fe   : > { %1372 = vpow2.f32 %v612_v53 }
 0x301   : > { %v721_v54 = vpop.xlane.xlu0 %720 }
 0x302   : > { %v722_v55 = vsub.f32 %v714_v37, %v721_v54 }
 0x303   : > { %v1371_v57 = vpop.eup %1370 }
 0x304   : > { %v723_v56 = vmul.f32 1.442695, %v722_v55  ;;  %v505_v61 = vpack.c.bf16 %v1371_v57, %v1371_v57  ;;  %v502_v2 = vsel %vm449_vm2, %v1371_v57, 0.0 }
 0x305   : > { %v507_v58 = vpop.permute.xlu0 %506 }
 0x306   : > { %1374 = vpow2.f32 %v723_v56  ;;  %v513_v59 = vsel %vm511_vm3, %v507_v58, 0  ;;  %v909_v56 = vld [vmem:[#allocation2] sm:$0xff] }
 0x307   : > { %1206 = vmatpush3.bf16.msra.mxu0 %v513_v59 }
 0x308   : > { %1217 = vmatprep.subr.bf16.mxu0 %v1588_v0 }
 0x309   : > { %v841_v11 = vpop.permute.xlu0 %840 }
 0x30a   : > { %1208 = vmatmul.mubr.msk.bf16.vlgmr.msra.gmra.mxu0 %vm449_vm2, %v505_v61  ;;  %v846_v13 = vsel %vm511_vm3, %v841_v11, 0 }
 0x30b   : > { %v1373_v63 = vpop.eup %1372  ;;  %1218 = vmatpush3.bf16.msra.mxu0 %v624_v62  ;;  %1219 = vmatprep.mubr.msk.bf16.mxu0 %vm1589_vm1, %v1588_v0  ;;  %v1164_v62 = vld [vmem:[#allocation9] ss:$0 sm:$0xff] }
 0x30c   : > { %v614_v1 = vsel %vm449_vm2, %v1373_v63, 0.0  ;;  %1229 = vmatprep.subr.bf16.mxu0 %v1588_v0  ;;  %v617_v3 = vpack.c.bf16 %v1373_v63, %v1373_v63 }
 0x30d   : > { %615 = vadd.xlane.f32.xlu1 %v614_v1 }
 0x311   : > { %503 = vadd.xlane.f32.xlu1 %v502_v2 }
 0x312   : > { %1220 = vmatmul.mubr.msk.bf16.vlgmr.msra.gmra.mxu0 %vm449_vm2, %v617_v3 }
 0x313   : > { %v1375_v4 = vpop.eup %1374  ;;  %1231 = vmatprep.mubr.msk.bf16.mxu0 %vm1589_vm1, %v1588_v0 }
 0x314   : > { %v725_v5 = vsel %vm449_vm2, %v1375_v4, 0.0  ;;  %v728_v12 = vpack.c.bf16 %v1375_v4, %v1375_v4 }
 0x315   : > { %726 = vadd.xlane.f32.xlu0 %v725_v5 }
 0x326   : > { %v832_v6 = vpop.xlane.xlu1 %831 }
 0x327   : > { %v833_v7 = vsub.f32 %v825_v46, %v832_v6 }
 0x329   : > { %v834_v8 = vmul.f32 1.442695, %v833_v7 }
 0x32a   : > { %v730_v9 = vpop.permute.xlu1 %729 }
 0x32b   : > { %1376 = vpow2.f32 %v834_v8  ;;  %v735_v10 = vsel %vm511_vm3, %v730_v9, 0 }
 0x32c   : > { %1230 = vmatpush3.bf16.msra.mxu0 %v735_v10 }
 0x32d   : > { %1241 = vmatprep.subr.bf16.mxu0 %v1588_v0 }
 0x32f   : > { %1232 = vmatmul.mubr.msk.bf16.vlgmr.msra.gmra.mxu0 %vm449_vm2, %v728_v12 }
 0x330   : > { %1242 = vmatpush3.bf16.msra.mxu0 %v846_v13  ;;  %1243 = vmatprep.mubr.msk.bf16.mxu0 %vm1589_vm1, %v1588_v0 }
 0x338   : > { %v1377_v14 = vpop.eup %1376 }
 0x339   : > { %v836_v15 = vsel %vm449_vm2, %v1377_v14, 0.0  ;;  %v839_v16 = vpack.c.bf16 %v1377_v14, %v1377_v14 }
 0x33a   : > { %837 = vadd.xlane.f32.xlu0 %v836_v15 }
 0x33b   : > { %1244 = vmatmul.mubr.msk.bf16.vlgmr.msra.gmra.mxu0 %vm449_vm2, %v839_v16 }
 0x396   : > { %v616_v17 = vpop.xlane.xlu1 %615 }
 0x397   : > { %1378 = vrcp.f32 %v616_v17 }
 0x39a   : > { %v504_v46 = vpop.xlane.xlu1 %503 }
 0x39e   : > { %v727_v29 = vpop.xlane.xlu0 %726 }
 0x39f   : > { %1380 = vrcp.f32 %v727_v29 }
 0x3a4   : > { %v1379_v22 = vpop.eup %1378 }
 0x3ac   : > { %v1381_v33 = vpop.eup %1380 }
 0x3c3   : > { %v838_v32 = vpop.xlane.xlu0 %837 }
 0x3c4   : > { %1382 = vrcp.f32 %v838_v32 }
 0x3c5   : > { %1384 = vrcp.f32 %v504_v46 }
 0x3ca   : > { %v549_v18 = vpop.f32.mrf.mxu0 }
 0x3cc   : > { %v1209_v19 = vpop.f32.mrf.mxu0 }
 0x3ce   : > { %v552_v20 = vpop.f32.mrf.mxu0 }
 0x3d0   : > { %v1210_v21 = vpop.f32.mrf.mxu0 }
 0x3d1   : > { %v1383_v40 = vpop.eup %1382 }
 0x3d2   : > { %v660_v23 = vpop.f32.mrf.mxu0  ;;  %v1385_v47 = vpop.eup %1384 }
 0x3d3   : > { %v667_v24 = vmul.f32 %v1379_v22, %v660_v23  ;;  %v556_v48 = vmul.f32 %v1385_v47, %v549_v18 }
 0x3d4   : > { %v1221_v25 = vpop.f32.mrf.mxu0 }
 0x3d5   : > { %v668_v26 = vpack.c.bf16 %v667_v24, %v667_v24  ;;  %v557_v51 = vpack.c.bf16 %v556_v48, %v556_v48 }
 0x3d6   : > { %v663_v27 = vpop.f32.mrf.mxu0 }
 0x3d7   : > { %892 = vrot.lane.b32.xlu0 %v668_v26, %s1601_s7 }
 0x3d8   : > { %v1222_v28 = vpop.f32.mrf.mxu0 }
 0x3ef   : > { %v771_v34 = vpop.f32.mrf.mxu0 }
 0x3f0   : > { %v778_v35 = vmul.f32 %v1381_v33, %v771_v34 }
 0x3f1   : > { %v1233_v36 = vpop.f32.mrf.mxu0 }
 0x3f2   : > { %v779_v37 = vpack.c.bf16 %v778_v35, %v778_v35 }
 0x3f3   : > { %v774_v38 = vpop.f32.mrf.mxu0 }
 0x3f4   : > { %895 = vrot.lane.b32.xlu1 %v779_v37, %s1602_s9 }
 0x3f5   : > { %v1234_v39 = vpop.f32.mrf.mxu0 }
 0x3fb   : > { %v882_v41 = vpop.f32.mrf.mxu0 }
 0x3fc   : > { %v889_v42 = vmul.f32 %v1383_v40, %v882_v41 }
 0x3fd   : > { %v1245_v43 = vpop.f32.mrf.mxu0 }
 0x3fe   : > { %v890_v44 = vpack.c.bf16 %v889_v42, %v889_v42 }
 0x3ff   : > { %v885_v45 = vpop.f32.mrf.mxu0 }
 0x400   : > { %898 = vrot.lane.b32.xlu1 %v890_v44, %s1603_s30 }
 0x401   : > { %v1246_v0 = vpop.f32.mrf.mxu0 }
 0x449   : > { %v893_v49 = vpop.permute.xlu0 %892 }
 0x44a   : > { %v902_v52 = vsel %vm449_vm2, %v557_v51, %v893_v49 }
 0x466   : > { %v896_v50 = vpop.permute.xlu1 %895 }
 0x467   : > { %v905_v53 = vsel %vm903_vm4, %v902_v52, %v896_v50 }
 0x472   : > { %v899_v54 = vpop.permute.xlu1 %898 }
 0x473   : > { %v908_v55 = vsel %vm906_vm5, %v905_v53, %v899_v54 }
 0x474   : > { %1252 = vmatmul.mubr.msk.bf16.vlgmr.msra.gmra.mxu1 %vm373_vm0, %v908_v55 }
 0x534   : > { %v962_v57 = vpop.f32.mrf.mxu1 }
 0x535   : > { %v968_v58 = vadd.f32 %v962_v57, %v909_v56 }
 0x536   : > { %v1253_v59 = vpop.f32.mrf.mxu1 }
 0x537   : > { %969 = vst.msk [vmem:[#allocation2] sm:$0xff] %vm373_vm0, %v968_v58 }
 0x538   : > { %v965_v60 = vpop.f32.mrf.mxu1 }
 0x53a   : > { %v1254_v61 = vpop.f32.mrf.mxu1 }
 0x53e   : > { %v973_v63 = vld [vmem:[#allocation2] sm:$0xff] }
 0x53f   : > { %v981_v1 = vadd.f32 %v1164_v62, %v973_v63 }
 0x541   : > { %982 = vst.msk [vmem:[%s359_s20] sm:$0xff] %vm373_vm0, %v981_v1 }
 0x542   : > { %1505 = shalt.err (!%p1502_p4)
}
 0x543   : > { %s1506_s29 = scalar_lea.hbm %s995_s16, 128  ;;  %s1510_s9 = scalar_lea.hbm %s1918_s6, 256 }
 0x544   : > { %p1507_p12 = scmp.ne.s32.totalorder %s995_s16, %s1506_s29  ;;  %p1511_p10 = scmp.lt.s32.totalorder %s995_s16, %s1918_s6 }
 0x545   : > { %p1512_p7 = scmp.lt.s32.totalorder %s1510_s9, %s1506_s29 }
 0x546   : > { %p1508_p0 = pnand %p1507_p12, %p1740_p3 }
 0x547   : > { %p1513_p8 = por %p1512_p7, %p1511_p10 }
 0x548   : > { %p1509_p5 = pneg %p1508_p0 }
 0x54a   : > { %p1514_p6 = pnand %p1513_p8, %p1509_p5 }
 0x54c   : > { %1517 = shalt.err (!%p1514_p6)
}
 0x54d   : > { %1269 = dma.vmem_to_hbm [thread:$0]  (%p1740_p3), %s998_s27, 128, %s995_s16, %s984_s13  }
 0x54e PF: > { %s1009_s17 = sand.u32 1, %s1560_s21   ;;  %p1936_p2 = scmp.ne.s32.totalorder %s1927_s8, 0 }
 0x54f   : > { %p1937_p11 = scmp.ge.s32.totalorder %s1580_s26, 2  ;;  %s1010_s20 = scalar_lea.sflag [#allocation5], %s1009_s17 }
 0x551   : > { %p1286_p9 = pnand %p1937_p11, %p1936_p2 }
 0x553   : > { %p1287_p13 = pneg %p1286_p9 }
 0x555   : > { %1555 = dma.done.wait (%p1287_p13), %s1010_s20, 128  }
 0x556   : > { %1557 = vsyncadd (%p1287_p13), %s1010_s20, 4294967168  ;;  %s24_s26 = sadd.s32 1, %s1580_s26   ;;  %s1938_s21 = smov %s1564_s22 }
 0x557   : > { %p21_p1 = scmp.ge.s32.totalorder %s24_s26, 4   ;;  %s1939_s22 = smov %s1568_s23 }
 0x558   : > { %s1940_s23 = smov %s1752_s10  ;;  %s1941_s24 = smov %s1576_s25 }
 0x559   : > { %s1942_s25 = smov %s1944_s18  ;;  %23 = sbr.rel (!%p21_p1) target bundleno = 11 (0xb), region = 117 }
 0x55e   :  { %1015 = vsyncpa [#allocation4], 1 }
 0x55f   :  { %1017 = vsyncpa [#allocation4 + $0x1], 1 }
 0x560   :  { %1018 = vsyncpa [#allocation7], 1 }
 0x561   :  { %1019 = vsyncpa [#allocation10], 1 }
 0x562   :  { %1020 = vsyncpa [#allocation5], 1 }
 0x563   :  { %1022 = vsyncpa [#allocation5 + $0x1], 1 }

</bundles_post_ra>
